<compile_context>
chip_gen: v7x
topology: tpu7x:2x2x1
jax: 0.10.0
libtpu: 0.0.40
codegen_flags: <defaults>
</compile_context>

<pallas_src>
import jax
import jax.numpy as jnp
from jax.experimental import pallas as pl
from jax.experimental.pallas import tpu as pltpu


def _prob_kernel_s2(x_ref, t_ref, o_ref):
    """Two-symbol softmax via the stable sigmoid identity (one exp/pixel)."""
    t = t_ref[...].astype(jnp.float32)                          # (rt, L)
    z0 = -jnp.abs(x_ref[0, 0, :, :].astype(jnp.float32)) * t    # (rt, L)
    z1 = -jnp.abs(x_ref[0, 1, :, :].astype(jnp.float32)) * t
    d = z0 - z1
    e = jnp.exp(-jnp.abs(d))                     # in (0, 1], never overflows
    inv = pl.reciprocal(1.0 + e, approx=False)   # exact recip: keeps 1e-5 tol
    p_hi = inv                                   # prob of the larger logit
    p_lo = e * inv                               # prob of the smaller logit
    ge = d >= 0
    o_ref[0, 0, :, :] = jnp.where(ge, p_hi, p_lo).astype(o_ref.dtype)
    o_ref[0, 1, :, :] = jnp.where(ge, p_lo, p_hi).astype(o_ref.dtype)


def _prob_kernel_general(x_ref, t_ref, o_ref):
    """Generic-S numerically-stable softmax over axis 1 (symbols)."""
    x = x_ref[...].astype(jnp.float32)           # (1, S, rt, L)
    t = t_ref[...].astype(jnp.float32)           # (rt, L)
    z = -jnp.abs(x) * t[None, None]
    m = jnp.max(z, axis=1, keepdims=True)        # S-way elementwise max (VPU)
    e = jnp.exp(z - m)
    denom = jnp.sum(e, axis=1, keepdims=True)    # S-way elementwise add (VPU)
    inv = pl.reciprocal(denom, approx=False)     # one recip + S muls, not S divs
    o_ref[...] = (e * inv).astype(o_ref.dtype)


def _choose_slab(n):
    """Factor n = rows * lanes with lanes a multiple of 128 (lane-dense) and,
    when possible, rows a multiple of 8 (sublane-dense)."""
    for l in (2048, 1024, 512, 256, 128):        # prefer sublane-aligned rows
        if n % l == 0 and (n // l) % 8 == 0:
            return n // l, l
    for l in (2048, 1024, 512, 256, 128):        # lane-dense only
        if n % l == 0:
            return n // l, l
    # n not a multiple of 128: single full-extent row (still a legal block).
    return 1, n


def _pick_row_tile(rows, lanes, no_symbols, itemsize, target_block_bytes):
    """Pick rows-per-block so one x block stays near target_block_bytes.
    Prefer a multiple-of-8 divisor of rows (no ragged / padded tiles)."""
    if rows <= 8:
        return rows
    budget = max(8, (target_block_bytes // (no_symbols * lanes * itemsize)) // 8 * 8)
    if rows <= budget:
        return rows
    for rt in range(budget, 7, -8):              # largest mult-of-8 divisor
        if rows % rt == 0:
            return rt
    return budget                                # ragged last tile (masked OOB)


def prob_layer(x, temp, *, no_channels, no_symbols=2,
               target_block_bytes=2 * 1024 * 1024, interpret=False):
    """x: (B, S*C, H, W), temp: (C, 1, 1). Returns (B, S*C, H, W)."""
    B, SC, H, W = x.shape
    C, S = no_channels, no_symbols
    assert SC == S * C, "channel dim must equal no_symbols * no_channels"

    n = C * H * W
    itemsize = jnp.dtype(x.dtype).itemsize
    rows, lanes = _choose_slab(n)
    rt = _pick_row_tile(rows, lanes, S, itemsize, target_block_bytes)

    # Contiguous reshape: free in HBM (same element order as (B, S, C, H, W)).
    x_r = x.reshape(B, S, rows, lanes)
    # Pre-broadcast temperature to the flattened per-symbol slab (one-time,
    # tiny: C*H*W f32). Same flattening order as x, so it lines up exactly.
    t_slab = jnp.broadcast_to(
        temp.reshape(C, 1).astype(jnp.float32), (C, H * W)
    ).reshape(rows, lanes)

    kernel = _prob_kernel_s2 if S == 2 else _prob_kernel_general
    # B is the fastest grid axis so the temp tile (depends only on r) is
    # revisited, not re-DMA'd, across the inner batch steps.
    grid = (pl.cdiv(rows, rt), B)

    out = pl.pallas_call(
        kernel,
        out_shape=jax.ShapeDtypeStruct((B, S, rows, lanes), x.dtype),
        grid_spec=pltpu.PrefetchScalarGridSpec(
            num_scalar_prefetch=0,
            grid=grid,
            in_specs=[
                pl.BlockSpec((1, S, rt, lanes), lambda r, b: (b, 0, r, 0)),
                pl.BlockSpec((rt, lanes), lambda r, b: (r, 0)),
            ],
            out_specs=pl.BlockSpec((1, S, rt, lanes), lambda r, b: (b, 0, r, 0)),
        ),
        compiler_params=pltpu.CompilerParams(
            dimension_semantics=("parallel", "parallel"),
            vmem_limit_bytes=32 * 1024 * 1024,
        ),
        interpret=interpret,
    )(x_r, t_slab)

    return out.reshape(B, SC, H, W)


def prob_layer_ref(x, temp, *, no_channels, no_symbols=2):
    """Pure-JAX reference mirroring the PyTorch forward."""
    B, SC, H, W = x.shape
    C, S = no_channels, no_symbols
    z = -jnp.abs(x).reshape(B, S, C, H, W) * temp[None, None]  # temp: (C,1,1)
    sm = jax.nn.softmax(z, axis=1)
    return sm.reshape(B, SC, H, W)


if __name__ == "__main__":
    # Small shapes consistent with the module: S=2 symbols, C=4 channels,
    # so input channel count is S*C = 8.
    B, S, C, H, W = 2, 2, 4, 16, 16
    key = jax.random.PRNGKey(0)
    k1, k2 = jax.random.split(key)

    x = jax.random.normal(k1, (B, S * C, H, W), dtype=jnp.float32)
    # Parameter shape from __init__: temp = ones((C, 1, 1)); use a non-trivial
    # deterministic init so the per-channel broadcast is exercised.
    temp = (1.0 + 0.1 * jnp.arange(C, dtype=jnp.float32)).reshape(C, 1, 1)

    out = jax.block_until_ready(prob_layer(x, temp, no_channels=C, no_symbols=S))
    ref = prob_layer_ref(x, temp, no_channels=C, no_symbols=S)
    assert out.shape == (B, S * C, H, W)
    assert jnp.allclose(out, ref, atol=1e-5, rtol=1e-5), "S=2 path mismatch"

    # Also exercise the generic-S softmax path (S=3).
    S3 = 3
    x3 = jax.random.normal(k2, (B, S3 * C, H, W), dtype=jnp.float32)
    out3 = jax.block_until_ready(prob_layer(x3, temp, no_channels=C, no_symbols=S3))
    ref3 = prob_layer_ref(x3, temp, no_channels=C, no_symbols=S3)
    assert jnp.allclose(out3, ref3, atol=1e-5, rtol=1e-5), "general path mismatch"

    print("KERNEL_OK")
</pallas_src>

<mosaic_0001>
module attributes {stable_mosaic.version = 11 : i64} {
  func.func @_prob_kernel_s2(%arg0: i32, %arg1: i32, %arg2: memref<1x2x8x128xf32, #tpu.memory_space<vmem>>, %arg3: memref<8x128xf32, #tpu.memory_space<vmem>>, %arg4: memref<1x2x8x128xf32, #tpu.memory_space<vmem>>) attributes {dimension_semantics = [#tpu.dimension_semantics<parallel>, #tpu.dimension_semantics<parallel>], iteration_bounds = array<i64: 1, 2>, scalar_prefetch = 0 : i64, scratch_operands = 0 : i64, tpu.core_type = #tpu.core_type<tc>, window_params = [{transform_indices = @transform_0, window_bounds = array<i64: 1, 2, 8, 128>}, {transform_indices = @transform_1, window_bounds = array<i64: 8, 128>}, {transform_indices = @transform_2, window_bounds = array<i64: 1, 2, 8, 128>}]} {
    %c0 = arith.constant 0 : index
    %c0_0 = arith.constant 0 : index
    %0 = vector.load %arg3[%c0, %c0_0] : memref<8x128xf32, #tpu.memory_space<vmem>>, vector<8x128xf32>
    %c0_1 = arith.constant 0 : index
    %c0_2 = arith.constant 0 : index
    %c0_3 = arith.constant 0 : index
    %c0_4 = arith.constant 0 : index
    %1 = vector.load %arg2[%c0_1, %c0_2, %c0_3, %c0_4] : memref<1x2x8x128xf32, #tpu.memory_space<vmem>>, vector<1x1x8x128xf32>
    %2 = vector.shape_cast %1 : vector<1x1x8x128xf32> to vector<8x128xf32>
    %3 = math.absf %2 : vector<8x128xf32>
    %cst = arith.constant 0.000000e+00 : f32
    %4 = vector.broadcast %cst : f32 to vector<8x128xf32>
    %5 = arith.subf %4, %3 : vector<8x128xf32>
    %6 = arith.mulf %5, %0 : vector<8x128xf32>
    %c0_5 = arith.constant 0 : index
    %c1 = arith.constant 1 : index
    %c0_6 = arith.constant 0 : index
    %c0_7 = arith.constant 0 : index
    %7 = vector.load %arg2[%c0_5, %c1, %c0_6, %c0_7] : memref<1x2x8x128xf32, #tpu.memory_space<vmem>>, vector<1x1x8x128xf32>
    %8 = vector.shape_cast %7 : vector<1x1x8x128xf32> to vector<8x128xf32>
    %9 = math.absf %8 : vector<8x128xf32>
    %cst_8 = arith.constant 0.000000e+00 : f32
    %10 = vector.broadcast %cst_8 : f32 to vector<8x128xf32>
    %11 = arith.subf %10, %9 : vector<8x128xf32>
    %12 = arith.mulf %11, %0 : vector<8x128xf32>
    %13 = arith.subf %6, %12 : vector<8x128xf32>
    %14 = math.absf %13 : vector<8x128xf32>
    %cst_9 = arith.constant 0.000000e+00 : f32
    %15 = vector.broadcast %cst_9 : f32 to vector<8x128xf32>
    %16 = arith.subf %15, %14 : vector<8x128xf32>
    %17 = math.exp %16 : vector<8x128xf32>
    %cst_10 = arith.constant 1.000000e+00 : f32
    %18 = vector.broadcast %cst_10 : f32 to vector<8x128xf32>
    %19 = arith.addf %18, %17 : vector<8x128xf32>
    %20 = tpu.reciprocal %19 : vector<8x128xf32> -> vector<8x128xf32>
    %21 = arith.mulf %17, %20 : vector<8x128xf32>
    %cst_11 = arith.constant 0.000000e+00 : f32
    %22 = vector.broadcast %cst_11 : f32 to vector<8x128xf32>
    %23 = arith.cmpf oge, %13, %22 : vector<8x128xf32>
    %24 = arith.select %23, %20, %21 : vector<8x128xi1>, vector<8x128xf32>
    %c0_12 = arith.constant 0 : index
    %c0_13 = arith.constant 0 : index
    %c0_14 = arith.constant 0 : index
    %c0_15 = arith.constant 0 : index
    %25 = vector.load %arg4[%c0_12, %c0_13, %c0_14, %c0_15] : memref<1x2x8x128xf32, #tpu.memory_space<vmem>>, vector<1x1x8x128xf32>
    %26 = vector.shape_cast %25 : vector<1x1x8x128xf32> to vector<8x128xf32>
    %27 = vector.shape_cast %24 : vector<8x128xf32> to vector<1x1x8x128xf32>
    tpu.vector_store %arg4[%c0_12, %c0_13, %c0_14, %c0_15], %27 {strides = array<i32>} : memref<1x2x8x128xf32, #tpu.memory_space<vmem>>, vector<1x1x8x128xf32>,
    %28 = arith.select %23, %21, %20 : vector<8x128xi1>, vector<8x128xf32>
    %c0_16 = arith.constant 0 : index
    %c1_17 = arith.constant 1 : index
    %c0_18 = arith.constant 0 : index
    %c0_19 = arith.constant 0 : index
    %29 = vector.load %arg4[%c0_16, %c1_17, %c0_18, %c0_19] : memref<1x2x8x128xf32, #tpu.memory_space<vmem>>, vector<1x1x8x128xf32>
    %30 = vector.shape_cast %29 : vector<1x1x8x128xf32> to vector<8x128xf32>
    %31 = vector.shape_cast %28 : vector<8x128xf32> to vector<1x1x8x128xf32>
    tpu.vector_store %arg4[%c0_16, %c1_17, %c0_18, %c0_19], %31 {strides = array<i32>} : memref<1x2x8x128xf32, #tpu.memory_space<vmem>>, vector<1x1x8x128xf32>,
    return
  }
  func.func @transform_0(%arg0: i32, %arg1: i32) -> (i32, i32, i32, i32) {
    %c0_i32 = arith.constant 0 : i32
    %c0_i32_0 = arith.constant 0 : i32
    %c0_i32_1 = arith.constant 0 : i32
    return %arg1, %c0_i32, %arg0, %c0_i32_0 : i32, i32, i32, i32
  }
  func.func @transform_1(%arg0: i32, %arg1: i32) -> (i32, i32) {
    %c0_i32 = arith.constant 0 : i32
    %c0_i32_0 = arith.constant 0 : i32
    return %arg0, %c0_i32 : i32, i32
  }
  func.func @transform_2(%arg0: i32, %arg1: i32) -> (i32, i32, i32, i32) {
    %c0_i32 = arith.constant 0 : i32
    %c0_i32_0 = arith.constant 0 : i32
    %c0_i32_1 = arith.constant 0 : i32
    return %arg1, %c0_i32, %arg0, %c0_i32_0 : i32, i32, i32, i32
  }
}

</mosaic_0001>

<bundles_post_ra>
// kernel: tpu_custom_call.1
= control target key start
LH: loop header
LB: loop body
LE: loop exit
PB: predicated region body
PF: predicated region fallthrough
CT: control target
= control target key end

     0   :  { %7 = vsyncpa [#allocation3], 0  ;;  %s826_s0 = inlined_call_operand.hbm [shape: f32[2,2,8,128], index: 0, kind: input, shape index: {}]   ;;  %s827_s1 = inlined_call_operand.hbm [shape: f32[8,128], index: 1, kind: input, shape index: {}]   ;;  %s828_s2 = inlined_call_operand.hbm [shape: f32[2,2,8,128], index: 2, kind: output, shape index: {}]  }
   0x1   :  { %9 = vsyncpa [#allocation3 + $0x1], 0 }
   0x2   :  { %10 = vsyncpa [#allocation6], 0 }
   0x3   :  { %11 = vsyncpa [#allocation4], 0 }
   0x4   :  { %13 = vsyncpa [#allocation4 + $0x1], 0  ;;  %s605_s9 = smov 0   ;;  %s607_s10 = smov 0  }
   0x5   :  { %s609_s11 = smov 0   ;;  %s611_s12 = smov 0  }
   0x6   :  { %s613_s13 = smov 0   ;;  %s615_s14 = smov 0  }
   0x7 LB: > { %s335_s15 = sadd.s32 4294967295, %s581_s14   ;;  %s336_s16 = sadd.s32 4294967294, %s581_s14   ;;  %s581_s14 = sphi %s615_s14, %s19_s14   ;;  %s577_s13 = sphi %s613_s13, %s856_s13   ;;  %s573_s12 = sphi %s611_s12, %s855_s12   ;;  %s569_s11 = sphi %s609_s11, %s854_s11   ;;  %s565_s10 = sphi %s607_s10, %s853_s10   ;;  %s561_s9 = sphi %s605_s9, %s852_s9  }
   0x8   : > { %s40_s17 = sadd.s32 1, %s569_s11  ;;  %p47_p0 = scmp.ne.s32.totalorder %s569_s11, %s565_s10 }
   0x9   : > { %p48_p1 = scmp.eq.s32.totalorder %s581_s14, 0  ;;  %p53_p2 = scmp.ne.s32.totalorder %s565_s10, %s561_s9 }
   0xa   : > { %p643_p3 = scmp.eq.s32.totalorder %s335_s15, 0  ;;  %p105_p4 = scmp.eq.s32.totalorder %s335_s15, 1 }
   0xb   : > { %p647_p5 = por %p48_p1, %p47_p0  ;;  %p111_p6 = scmp.eq.s32.totalorder %s336_s16, 1 }
   0xc   : > { %s835_s18 = scalar_select %p643_p3, 1, 0 }
   0xd   : > { %p653_p7 = por %p643_p3, %p53_p2  ;;  %p657_p8 = por %p105_p4, %p47_p0 }
   0xe   : > { %p661_p9 = por %p111_p6, %p53_p2  ;;  %p337_p10 = scmp.ge.s32.totalorder %s581_s14, 1 }
   0xf   : > { %s837_s20 = scalar_select %p653_p7, 1, 0 }
  0x10   : > { %s838_s21 = scalar_select %p657_p8, 1, 0 }
  0x11   : > { %s839_s22 = scalar_select %p661_p9, 1, 0 }
  0x12   : > { %p118_p11 = scmp.lt.s32.totalorder %s581_s14, 3  ;;  %s583_s24 = smov [#allocation5]  }
  0x13   : > { %s133_s25 = sshll.u32 %s583_s24, 4  ;;  %p377_p1 = scmp.lt.s32.totalorder %s581_s14, 2  ;;  %s134_s25 = int_to_ptr.vmem [resolvable:$true] %s133_s25 }
  0x14   : > { %p668_p13 = pnand %p337_p10, %p118_p11  ;;  %s28_s28 = sadd.s32 1, %s577_s13 }
  0x15   : > { %p677_p4 = pnand %p377_p1, %p647_p5  ;;  %p688_p6 = scmp.ge.s32.totalorder %s28_s28, 2 }
  0x16   : > { %s840_s23 = scalar_select %p668_p13, 1, 0 }
  0x17   : > { %p364_p0 = pneg %p668_p13  ;;  %s144_s30 = sand.u32 1, %s569_s11  }
  0x18   : > { %s841_s26 = scalar_select %p677_p4, 1, 0 }
  0x19   : > { %p683_p2 = pnand %p364_p0, %p643_p3  ;;  %s437_s5 = scalar_lea.hbm %s827_s1, 128 }
  0x1a   : > { %s843_s29 = scalar_select %p688_p6, 1, 0 }
  0x1b   : > { %p438_p5 = scmp.ne.s32.totalorder %s827_s1, %s437_s5  ;;  %p439_p10 = pneg %p683_p2 }
  0x1c   : > { %p444_p0 = scmp.lt.u32.totalorder %s437_s5, %s827_s1 }
  0x1d   : > { %p440_p11 = pnand %p439_p10, %p438_p5 }
  0x1f   : > { %p441_p1 = pneg %p440_p11 }
  0x21   : > { %p446_p12 = pnand %p444_p0, %p441_p1 }
  0x23   : > { %449 = shalt.err (!%p446_p12)
}
  0x24   : > { %s450_s16 = scalar_lea.vmem %s134_s25, 128  ;;  %p458_p7 = scmp.lt.s32.totalorder %s134_s25, %s134_s25 }
  0x25   : > { %p451_p9 = scmp.ne.s32.totalorder %s134_s25, %s450_s16  ;;  %p459_p13 = scmp.lt.s32.totalorder %s450_s16, %s450_s16 }
  0x27   : > { %p453_p8 = pnand %p451_p9, %p439_p10  ;;  %p460_p4 = por %p459_p13, %p458_p7 }
  0x29   : > { %p454_p3 = pneg %p453_p8 }
  0x2b   : > { %p461_p6 = pnand %p460_p4, %p454_p3 }
  0x2d   : > { %464 = shalt.err (!%p461_p6)
}
  0x2e   : > { %367 = dma.hbm_to_vmem [thread:$0]  (!%p683_p2), %s827_s1, 128, %s134_s25, [#allocation6]  }
  0x2f   : > { %p844_p9 = scmp.ne.s32.totalorder %s843_s29, 0  ;;  %s340_s3 = sshll.u32 %s144_s30, 4 }
  0x30   : > { %s354_s5 = sshll.u32 %s577_s13, 8  ;;  %s148_s8 = scalar_lea.vmem [#allocation2], %s340_s3 }
  0x31   : > { %s858_s28 = smov (%p844_p9, %s28_s28), 0  ;;  %s719_s7 = scalar_lea.hbm %s826_s0, %s354_s5 }
  0x32   : > { %s35_s4 = ssub.s32 %s577_s13, %s858_s28  ;;  %s156_s15 = sshll.u32 %s148_s8, 4  ;;  %s726_s15 = int_to_ptr.vmem [resolvable:$true] %s156_s15 }
  0x33   : > { %p38_p3 = scmp.eq.s32.totalorder %s35_s4, 0  ;;  %s728_s29 = scalar_lea.sflag [#allocation3], %s144_s30 }
  0x34   : > { %s465_s16 = scalar_lea.hbm %s719_s7, 256  ;;  %p845_p8 = scmp.ne.s32.totalorder %s841_s26, 0 }
  0x35   : > { %s724_s25 = scalar_select %p38_p3, %s569_s11, %s40_s17  }
  0x36   : > { %p466_p7 = scmp.ne.s32.totalorder %s719_s7, %s465_s16  ;;  %p467_p12 = pneg %p845_p8 }
  0x37   : > { %s470_s3 = scalar_lea.hbm %s826_s0, 512  ;;  %p471_p2 = scmp.lt.u32.totalorder %s719_s7, %s826_s0 }
  0x38   : > { %p468_p13 = pnand %p467_p12, %p466_p7  ;;  %p472_p6 = scmp.lt.u32.totalorder %s470_s3, %s465_s16 }
  0x39   : > { %p474_p10 = scmp.lt.u32.totalorder %s465_s16, %s719_s7 }
  0x3a   : > { %p469_p4 = pneg %p468_p13  ;;  %p473_p5 = por %p472_p6, %p471_p2 }
  0x3c   : > { %p475_p11 = por %p474_p10, %p473_p5 }
  0x3e   : > { %p476_p1 = pnand %p475_p11, %p469_p4 }
  0x40   : > { %479 = shalt.err (!%p476_p1)
}
  0x41   : > { %s480_s17 = scalar_lea.vmem %s726_s15, 256  ;;  %s584_s30 = smov [#allocation2]  }
  0x42   : > { %p481_p0 = scmp.ne.s32.totalorder %s726_s15, %s480_s17  ;;  %s485_s27 = sshll.u32 %s584_s30, 4  ;;  %s486_s27 = int_to_ptr.vmem [resolvable:$false] %s485_s27 }
  0x43   : > { %s487_s6 = scalar_lea.vmem %s486_s27, 512  ;;  %p488_p7 = scmp.lt.s32.totalorder %s726_s15, %s486_s27 }
  0x44   : > { %p483_p9 = pnand %p481_p0, %p467_p12  ;;  %p489_p13 = scmp.lt.s32.totalorder %s487_s6, %s480_s17 }
  0x46   : > { %p484_p3 = pneg %p483_p9  ;;  %p490_p2 = por %p489_p13, %p488_p7 }
  0x48   : > { %p491_p6 = pnand %p490_p2, %p484_p3 }
  0x4a   : > { %494 = shalt.err (!%p491_p6)
}
  0x4b   : > { %s585_s8 = smov 128   ;;  %s586_s16 = smov 8  }
  0x4c   : > { %371 = dma.hbm_to_vmem [thread:$0]  (!%p845_p8), %s719_s7, 256, %s726_s15, %s728_s29, %s585_s8, %s585_s8, %s586_s16  }
  0x4d   : > { %p846_p12 = scmp.ne.s32.totalorder %s840_s23, 0 }
  0x4e   : > { %s759_s19 = sand.u32 (!%p846_p12), 1, %s565_s10   ;;  %p847_p4 = scmp.ne.s32.totalorder (!%p846_p12), %s837_s20, 0 }
  0x4f   : > { %168 = sbr.rel (%p846_p12) target bundleno = 147 (0x93), region = 28  ;;  %s344_s24 = sshll.u32 (!%p846_p12), %s759_s19, 4 }
  0x50   : > { %s171_s3 = scalar_lea.sflag (!%p846_p12), [#allocation3], %s759_s19  ;;  %s174_s4 = scalar_lea.vmem (!%p846_p12), [#allocation2], %s344_s24 }
  0x56   : > { %548 = dma.done.wait (%p847_p4), %s171_s3, 256  }
  0x57   : > { %550 = vsyncadd (%p847_p4), %s171_s3, 4294967040  ;;  %p848_p5 = scmp.ne.s32.totalorder %s835_s18, 0 }
  0x59   : > { %552 = dma.done.wait (%p848_p5), [#allocation6], 128  }
  0x5a   : > { %554 = vsyncadd (%p848_p5), [#allocation6], 4294967168  ;;  %v200_v0 = vld [vmem:[%s174_s4] sm:$0xff]  ;;  %v347_v1 = vld [vmem:[%s174_s4 + $0x8] sm:$0xff]  ;;  %s198_s18 = scalar_lea.vmem [#allocation7], %s344_s24  ;;  %s355_s23 = sshll.u32 %s573_s12, 8 }
  0x5b   : > { %v201_v2 = vand.u32 2147483647, %v200_v0  ;;  %v206_v3 = vand.u32 2147483647, %v347_v1  ;;  %v199_v4 = vld [vmem:[#allocation5] sm:$0xff]  ;;  %s238_s20 = sshll.u32 %s198_s18, 4  ;;  %s777_s15 = scalar_lea.hbm %s828_s2, %s355_s23  ;;  %s772_s20 = int_to_ptr.vmem [resolvable:$true] %s238_s20 }
  0x5c   : > { %s224_s29 = scalar_lea.sflag [#allocation4], %s759_s19  ;;  %s495_s5 = scalar_lea.vmem %s772_s20, 256 }
  0x5d   : > { %v202_v5 = vsub.f32 0.0, %v201_v2  ;;  %v207_v6 = vsub.f32 0.0, %v206_v3  ;;  %p496_p8 = scmp.ne.s32.totalorder %s772_s20, %s495_s5  ;;  %p849_p10 = scmp.ne.s32.totalorder %s838_s21, 0 }
  0x5e   : > { %s587_s12 = smov [#allocation7]  }
  0x5f   : > { %v203_v7 = vmul.f32 %v202_v5, %v199_v4  ;;  %v208_v8 = vmul.f32 %v207_v6, %v199_v4  ;;  %p497_p11 = pnand %p496_p8, %p849_p10  ;;  %s499_s17 = sshll.u32 %s587_s12, 4  ;;  %s500_s17 = int_to_ptr.vmem [resolvable:$false] %s499_s17 }
  0x60   : > { %s501_s30 = scalar_lea.vmem %s500_s17, 512  ;;  %p502_p0 = scmp.lt.s32.totalorder %s772_s20, %s500_s17 }
  0x61   : > { %v209_v9 = vsub.f32 %v203_v7, %v208_v8  ;;  %p498_p1 = pneg %p497_p11  ;;  %p503_p9 = scmp.lt.s32.totalorder %s501_s30, %s495_s5 }
  0x63   : > { %v210_v10 = vand.u32 2147483647, %v209_v9  ;;  %vm217_vm0 = vcmp.ge.f32.partialorder %v209_v9, 0.0  ;;  %p504_p3 = por %p503_p9, %p502_p0 }
  0x65   : > { %v211_v11 = vsub.f32 0.0, %v210_v10  ;;  %p505_p7 = pnand %p504_p3, %p498_p1 }
  0x67   : > { %v212_v12 = vmul.f32 1.442695, %v211_v11 }
  0x69   : > { %433 = vpow2.f32 %v212_v12 }
  0x73   : > { %v434_v13 = vpop.eup %433 }
  0x74   : > { %v214_v14 = vadd.f32 1.0, %v434_v13 }
  0x76   : > { %435 = vrcp.f32 %v214_v14 }
  0x80   : > { %v436_v15 = vpop.eup %435 }
  0x81   : > { %v216_v16 = vmul.f32 %v436_v15, %v434_v13 }
  0x83   : > { %v218_v17 = vsel %vm217_vm0, %v436_v15, %v216_v16  ;;  %v220_v18 = vsel %vm217_vm0, %v216_v16, %v436_v15 }
  0x84   : > { %219 = vst [vmem:[%s198_s18] sm:$0xff] %v218_v17  ;;  %348 = vst [vmem:[%s198_s18 + $0x8] sm:$0xff] %v220_v18 }
  0x85   : > { %508 = shalt.err (!%p505_p7)
}
  0x86   : > { %s509_s27 = scalar_lea.hbm %s777_s15, 256  ;;  %s513_s16 = scalar_lea.hbm %s828_s2, 512 }
  0x87   : > { %p510_p13 = scmp.ne.s32.totalorder %s777_s15, %s509_s27  ;;  %p514_p12 = scmp.lt.u32.totalorder %s777_s15, %s828_s2 }
  0x88   : > { %p515_p4 = scmp.lt.u32.totalorder %s513_s16, %s509_s27  ;;  %p517_p8 = scmp.lt.u32.totalorder %s509_s27, %s777_s15 }
  0x89   : > { %p511_p2 = pnand %p510_p13, %p849_p10 }
  0x8a   : > { %p516_p5 = por %p515_p4, %p514_p12 }
  0x8b   : > { %p512_p6 = pneg %p511_p2 }
  0x8c   : > { %p518_p11 = por %p517_p8, %p516_p5 }
  0x8e   : > { %p519_p1 = pnand %p518_p11, %p512_p6 }
  0x90   : > { %522 = shalt.err (!%p519_p1)
}
  0x91   : > { %s588_s4 = smov 128   ;;  %s589_s18 = smov 8  }
  0x92   : > { %362 = dma.vmem_to_hbm [thread:$0]  (%p849_p10), %s772_s20, 256, %s777_s15, %s224_s29, %s588_s4, %s588_s4, %s589_s18  }
  0x93 PF: > { %s253_s23 = sand.u32 1, %s561_s9   ;;  %p850_p0 = scmp.ne.s32.totalorder %s839_s22, 0 }
  0x94   : > { %p851_p9 = scmp.ge.s32.totalorder %s581_s14, 2  ;;  %s254_s26 = scalar_lea.sflag [#allocation4], %s253_s23 }
  0x96   : > { %p373_p3 = pnand %p851_p9, %p850_p0 }
  0x98   : > { %556 = dma.done.wait (!%p373_p3), %s254_s26, 256  }
  0x99   : > { %558 = vsyncadd (!%p373_p3), %s254_s26, 4294967040  ;;  %s19_s14 = sadd.s32 1, %s581_s14   ;;  %s852_s9 = smov %s565_s10 }
  0x9a   : > { %p16_p7 = scmp.ge.s32.totalorder %s19_s14, 4   ;;  %s853_s10 = smov %s569_s11 }
  0x9b   : > { %s854_s11 = smov %s724_s25  ;;  %s855_s12 = smov %s577_s13 }
  0x9c   : > { %s856_s13 = smov %s858_s28  ;;  %18 = sbr.rel (!%p16_p7) target bundleno = 7 (0x7), region = 80 }
  0xa3   :  { %259 = vsyncpa [#allocation3], 1 }
  0xa4   :  { %261 = vsyncpa [#allocation3 + $0x1], 1 }
  0xa5   :  { %262 = vsyncpa [#allocation6], 1 }
  0xa6   :  { %263 = vsyncpa [#allocation4], 1 }
  0xa7   :  { %265 = vsyncpa [#allocation4 + $0x1], 1 }

</bundles_post_ra>
